<compile_context>
chip_gen: v7x
topology: tpu7x:2x2x1
jax: 0.10.0
libtpu: 0.0.40
codegen_flags: <defaults>
</compile_context>

<pallas_src>
import functools

import jax
import jax.numpy as jnp
from jax.experimental import pallas as pl
from jax.experimental.pallas import tpu as pltpu


def _vmem_limit_bytes():
    """~3/4 of physical VMEM: ~48 MiB on v7x (64 MiB/TC), ~96 MiB on v5e/v6e (128 MiB)."""
    try:
        cap = int(pltpu.get_tpu_info().vmem_capacity_bytes)
    except Exception:
        cap = 64 * 1024 * 1024
    return max(32 * 1024 * 1024, min(cap * 3 // 4, 100 * 1024 * 1024))


_VMEM_LIMIT = _vmem_limit_bytes()


def _pick_point_tile(dim, bytes_per_row):
    """Largest tile of `dim` that divides it and keeps the double-buffered working set
    comfortably inside the VMEM budget (v5e/v6e take 256-512 tiles, v7x stays at 128)."""
    if dim % 128 != 0:
        return dim                          # small / odd sizes: one full-width block
    for t in (512, 256, 128):
        if dim % t == 0 and 2 * t * bytes_per_row <= _VMEM_LIMIT // 2:
            return t
    return 128


# ----------------------------------------------------------------------------
# Pallas kernel 1: farthest point sampling (emits the sampled xyz directly)
# ----------------------------------------------------------------------------
def _fps_kernel(x_ref, o_ref, dist_ref, *, npoint):
    # x_ref: (1, 3, 8, N//8) f32 -- each coordinate laid out sublane-dense (8, N//8)
    x2 = x_ref[0, 0]
    y2 = x_ref[0, 1]
    z2 = x_ref[0, 2]
    nl = x2.shape[1]
    n = 8 * nl
    sub = jax.lax.broadcasted_iota(jnp.int32, (8, nl), 0)
    lane = jax.lax.broadcasted_iota(jnp.int32, (8, nl), 1)
    idx = sub * nl + lane                                  # original point index

    def rmax(v):
        return jnp.max(jnp.max(v, axis=1, keepdims=True), axis=0, keepdims=True)

    def rmin(v):
        return jnp.min(jnp.min(v, axis=1, keepdims=True), axis=0, keepdims=True)

    def rsum(v):
        return jnp.sum(jnp.sum(v, axis=1, keepdims=True), axis=0, keepdims=True)

    dist_ref[...] = jnp.full((8, nl), 1e10, jnp.float32)

    # first centroid = point 0 (same convention as the CUDA farthest_point_sample)
    lx = x2[0:1, 0:1]
    ly = y2[0:1, 0:1]
    lz = z2[0:1, 0:1]
    o_ref[0, 0:1, 0:1] = lx
    o_ref[0, 0:1, 1:2] = ly
    o_ref[0, 0:1, 2:3] = lz

    def body(i, carry):
        cx, cy, cz = carry                                 # last point carried in regs
        dx = x2 - cx
        dy = y2 - cy
        dz = z2 - cz
        d = dx * dx + dy * dy + dz * dz                    # (8, N/8) VPU
        dist = jnp.minimum(dist_ref[...], d)
        dist_ref[...] = dist
        m = rmax(dist)                                     # (1, 1)
        j = rmin(jnp.where(dist == m, idx, n))             # first argmax index, (1, 1)
        onehot = idx == j
        nx = rsum(jnp.where(onehot, x2, 0.0))
        ny = rsum(jnp.where(onehot, y2, 0.0))
        nz = rsum(jnp.where(onehot, z2, 0.0))
        # stores are off the serial critical path (nothing in the loop reads o_ref)
        o_ref[0, pl.ds(i, 1), 0:1] = nx
        o_ref[0, pl.ds(i, 1), 1:2] = ny
        o_ref[0, pl.ds(i, 1), 2:3] = nz
        return (nx, ny, nz)

    jax.lax.fori_loop(1, npoint, body, (lx, ly, lz))


def farthest_point_sample_xyz(xyz, npoint):
    """xyz: (B, N, 3) f32 -> new_xyz (B, npoint, 3) f32 (same algorithm as the CUDA op)."""
    B, N, _ = xyz.shape
    assert N % 8 == 0, "FPS kernel expects N to be a multiple of 8"
    xt = jnp.transpose(xyz, (0, 2, 1)).reshape(B, 3, 8, N // 8)
    kern = functools.partial(_fps_kernel, npoint=npoint)
    return pl.pallas_call(
        kern,
        out_shape=jax.ShapeDtypeStruct((B, npoint, 3), jnp.float32),
        grid=(B,),
        in_specs=[pl.BlockSpec((1, 3, 8, N // 8), lambda b: (b, 0, 0, 0))],
        out_specs=pl.BlockSpec((1, npoint, 3), lambda b: (b, 0, 0)),
        scratch_shapes=[pltpu.VMEM((8, N // 8), jnp.float32)],
        compiler_params=pltpu.CompilerParams(
            dimension_semantics=("parallel",),
            vmem_limit_bytes=_VMEM_LIMIT),
    )(xt)


# ----------------------------------------------------------------------------
# Pallas kernel 2: pairwise squared distance (calc_square_dist hot path)
# ----------------------------------------------------------------------------
def _sqdist_kernel(a_ref, bt_ref, o_ref):
    a = a_ref[0]                              # (tm, 3) f32 sampled centers
    ax = a[:, 0:1]
    ay = a[:, 1:2]
    az = a[:, 2:3]
    bx = bt_ref[0, 0:1, :]                    # (1, N) f32 all points, channel-major
    by = bt_ref[0, 1:2, :]
    bz = bt_ref[0, 2:3, :]
    a2 = ax * ax + ay * ay + az * az          # (tm, 1)
    b2 = bx * bx + by * by + bz * bz          # (1, N)
    coor = ax * bx + ay * by + az * bz        # (tm, N) -- 3 VPU broadcast FMAs, no MXU
    o_ref[0] = jnp.maximum(a2 + b2 - 2.0 * coor, 0.0)   # clamp fp cancellation


def pairwise_sqdist(a, b_t):
    """calc_square_dist: a (B, M, 3) f32, b_t (B, 3, N) f32 -> (B, M, N) f32."""
    B, M, _ = a.shape
    N = b_t.shape[2]
    tm = _pick_point_tile(M, N * 4 + 64)
    return pl.pallas_call(
        _sqdist_kernel,
        out_shape=jax.ShapeDtypeStruct((B, M, N), jnp.float32),
        grid=(B, M // tm),
        in_specs=[pl.BlockSpec((1, tm, 3), lambda i, j: (i, j, 0)),
                  pl.BlockSpec((1, 3, N), lambda i, j: (i, 0, 0))],
        out_specs=pl.BlockSpec((1, tm, N), lambda i, j: (i, j, 0)),
        compiler_params=pltpu.CompilerParams(
            dimension_semantics=("parallel", "parallel"),
            vmem_limit_bytes=_VMEM_LIMIT),
    )(a, b_t)


# ----------------------------------------------------------------------------
# Pallas kernel 3: all MLP branches (two 1x1 convs + ReLU) + max-pool, fused
# ----------------------------------------------------------------------------
def _fused_mlp_kernel(gfeat_ref, gxyz_ref, nxyz_ref, *refs, branch_specs):
    o_ref = refs[-1]
    wrefs = refs[:-1]
    gfeat = gfeat_ref[0]                                   # (S_max, C, tp) bf16
    rel = gxyz_ref[0] - nxyz_ref[0][None, :, :]            # (S_max, 3, tp) rel-xyz in f32

    c_off = 0
    for bi, (nsample, h1, h2) in enumerate(branch_specs):
        w1f = wrefs[5 * bi + 0][...]                       # (h1, C)  bf16
        w1x = wrefs[5 * bi + 1][...]                       # (h1, 3)  f32
        b1 = wrefs[5 * bi + 2][...]                        # (h1, 1)  f32
        w2 = wrefs[5 * bi + 3][...]                        # (h2, h1) bf16
        b2 = wrefs[5 * bi + 4][...]                        # (h2, 1)  f32

        pooled = None
        for s in range(nsample):                           # static unroll, running max
            # layer 1: 1x1 conv over channels == (h1, C) @ (C, tp) on the MXU
            h = jnp.dot(w1f, gfeat[s], preferred_element_type=jnp.float32)   # (h1, tp)
            for c in range(3):                             # relative-xyz term, f32 VPU
                h = h + w1x[:, c:c + 1] * rel[s, c:c + 1, :]
            h = jnp.maximum(h + b1, 0.0)                   # layer-1 bias + ReLU
            # layer 2
            y = jnp.dot(w2, h.astype(jnp.bfloat16),
                        preferred_element_type=jnp.float32)                  # (h2, tp)
            pooled = y if pooled is None else jnp.maximum(pooled, y)
        # layer-2 bias + ReLU after the pool: relu(max_s(y)+b2) == max_s(relu(y+b2))
        o_ref[0, c_off:c_off + h2, :] = jnp.maximum(pooled + b2, 0.0)
        c_off += h2


def fused_mlp_maxpool(g_feat, g_xyz, nxyz_t, branch_specs, params):
    """g_feat: (B, S_max, C, P) bf16, g_xyz: (B, S_max, 3, P) f32, nxyz_t: (B, 3, P) f32."""
    B, s_max, C, P = g_feat.shape
    total_out = sum(h2 for (_, _, h2) in branch_specs)
    max_h = max(max(h1, h2) for (_, h1, h2) in branch_specs)
    bytes_per_point = s_max * (C * 2 + 12 + 12) + (total_out + 4 * max_h) * 4
    tp = _pick_point_tile(P, bytes_per_point)

    in_specs = [
        pl.BlockSpec((1, s_max, C, tp), lambda b, p: (b, 0, 0, p)),
        pl.BlockSpec((1, s_max, 3, tp), lambda b, p: (b, 0, 0, p)),
        pl.BlockSpec((1, 3, tp), lambda b, p: (b, 0, p)),
    ]
    args = [g_feat, g_xyz, nxyz_t]
    for pset in params:
        for w in pset:
            in_specs.append(pl.BlockSpec(w.shape, lambda b, p: (0, 0)))
            args.append(w)

    kern = functools.partial(_fused_mlp_kernel,
                             branch_specs=tuple(tuple(s) for s in branch_specs))
    return pl.pallas_call(
        kern,
        out_shape=jax.ShapeDtypeStruct((B, total_out, P), jnp.float32),
        grid=(B, P // tp),
        in_specs=in_specs,
        out_specs=pl.BlockSpec((1, total_out, tp), lambda b, p: (b, 0, p)),
        compiler_params=pltpu.CompilerParams(
            dimension_semantics=("parallel", "parallel"),
            vmem_limit_bytes=_VMEM_LIMIT),
    )(*args)


# ----------------------------------------------------------------------------
# Module wrapper
# ----------------------------------------------------------------------------
class PointnetSAModulePallas:
    """Pallas port of _PointnetSAModuleBase.forward with pool_method='max_pool'.

    Each shared MLP is two 1x1 Conv2d layers (identity BatchNorm folded in) + ReLU,
    use_xyz=True.  Grouping uses kNN over calc_square_dist.
    """

    def __init__(self, npoint, nsamples, mlps, key):
        assert len(nsamples) == len(mlps)
        self.npoint = npoint
        self.cin = mlps[0][0]
        self.branch_specs = []
        self.params = []
        for nsample, spec in zip(nsamples, mlps):
            assert len(spec) == 3, "this port implements 2-layer shared MLPs"
            cin, h1, h2 = spec
            assert cin == self.cin
            key, k1, k2 = jax.random.split(key, 3)
            w1 = 0.1 * jax.random.normal(k1, (cin, h1), jnp.float32)
            w2 = 0.1 * jax.random.normal(k2, (h1, h2), jnp.float32)
            # Channel-major weights: the xyz rows stay f32 so the relative-coordinate
            # term is computed at full precision; feature rows in bf16 for the MXU.
            w1x = jnp.transpose(w1[:3, :])                        # (h1, 3)     f32
            w1f = jnp.transpose(w1[3:, :]).astype(jnp.bfloat16)   # (h1, cin-3) bf16
            b1 = jnp.zeros((h1, 1), jnp.float32)
            w2t = jnp.transpose(w2).astype(jnp.bfloat16)          # (h2, h1)    bf16
            b2 = jnp.zeros((h2, 1), jnp.float32)
            self.branch_specs.append((int(nsample), h1, h2))
            self.params.append((w1f, w1x, b1, w2t, b2))

    def __call__(self, xyz, features, new_xyz=None):
        # xyz: (B, N, 3) f32, features: (B, N, C) f32 with C == cin - 3 (use_xyz=True)
        assert features is not None and features.shape[-1] == self.cin - 3
        if new_xyz is None and self.npoint is not None:
            new_xyz = farthest_point_sample_xyz(xyz, self.npoint)           # (B, P, 3)

        xyz_t = jnp.transpose(xyz, (0, 2, 1))                               # (B, 3, N)

        # ---- grouping work shared by all branches (one sqdist, one top-k, one gather) ----
        # TODO(synk): the radius ball-query grouper (QueryAndGroup) has no clean Pallas
        # equivalent; kNN by squared distance (calc_square_dist) is used instead.
        s_max = max(ns for (ns, _, _) in self.branch_specs)
        dist = pairwise_sqdist(new_xyz, xyz_t)                              # (B, P, N)
        _, idx = jax.lax.top_k(-dist, s_max)                                # nearest-first
        # TODO(synk): the neighbor gather stays in XLA; fusing it into the MLP kernel via
        # scalar-prefetched indices + manual DMA would remove one HBM round trip.
        idx_g = jnp.transpose(idx, (0, 2, 1))[:, :, None, :]                # (B, S, 1, P)
        feat_t = jnp.transpose(features, (0, 2, 1)).astype(jnp.bfloat16)    # (B, C, N)
        g_feat = jnp.take_along_axis(feat_t[:, None, :, :], idx_g, axis=3)  # (B,S,C,P) bf16
        g_xyz = jnp.take_along_axis(xyz_t[:, None, :, :], idx_g, axis=3)    # (B,S,3,P) f32
        nxyz_t = jnp.transpose(new_xyz, (0, 2, 1))                          # (B, 3, P) f32

        new_features = fused_mlp_maxpool(g_feat, g_xyz, nxyz_t,
                                         self.branch_specs, self.params)    # (B, sum, P)
        return new_xyz, new_features


if __name__ == "__main__":
    key = jax.random.PRNGKey(0)
    kx, kf, kw = jax.random.split(key, 3)

    B, N, C = 2, 64, 4
    npoint = 16
    xyz = jax.random.normal(kx, (B, N, 3), jnp.float32)
    features = jax.random.normal(kf, (B, N, C), jnp.float32)

    module = PointnetSAModulePallas(
        npoint=npoint,
        nsamples=[8, 16],
        mlps=[[C + 3, 16, 32], [C + 3, 16, 32]],
        key=kw,
    )

    new_xyz, new_features = module(xyz, features)
    jax.block_until_ready((new_xyz, new_features))

    assert new_xyz.shape == (B, npoint, 3)
    assert new_features.shape == (B, 64, npoint)   # sum of mlp[-1] = 32 + 32
    assert bool(jnp.all(jnp.isfinite(new_xyz)))
    assert bool(jnp.all(jnp.isfinite(new_features)))
    print("KERNEL_OK")
</pallas_src>

<mosaic_0001>
module attributes {stable_mosaic.version = 11 : i64} {
  func.func @_fps_kernel(%arg0: i32, %arg1: memref<1x3x8x8xf32, #tpu.memory_space<vmem>>, %arg2: memref<1x16x3xf32, #tpu.memory_space<vmem>>, %arg3: memref<8x8xf32, #tpu.memory_space<vmem>>) attributes {dimension_semantics = [#tpu.dimension_semantics<parallel>], iteration_bounds = array<i64: 2>, scalar_prefetch = 0 : i64, scratch_operands = 1 : i64, tpu.core_type = #tpu.core_type<tc>, window_params = [{transform_indices = @transform_0, window_bounds = array<i64: 1, 3, 8, 8>}, {transform_indices = @transform_1, window_bounds = array<i64: 1, 16, 3>}]} {
    %c0 = arith.constant 0 : index
    %c0_0 = arith.constant 0 : index
    %c0_1 = arith.constant 0 : index
    %c0_2 = arith.constant 0 : index
    %0 = vector.load %arg1[%c0, %c0_0, %c0_1, %c0_2] : memref<1x3x8x8xf32, #tpu.memory_space<vmem>>, vector<1x1x8x8xf32>
    %1 = vector.shape_cast %0 : vector<1x1x8x8xf32> to vector<8x8xf32>
    %c0_3 = arith.constant 0 : index
    %c1 = arith.constant 1 : index
    %c0_4 = arith.constant 0 : index
    %c0_5 = arith.constant 0 : index
    %2 = vector.load %arg1[%c0_3, %c1, %c0_4, %c0_5] : memref<1x3x8x8xf32, #tpu.memory_space<vmem>>, vector<1x1x8x8xf32>
    %3 = vector.shape_cast %2 : vector<1x1x8x8xf32> to vector<8x8xf32>
    %c0_6 = arith.constant 0 : index
    %c2 = arith.constant 2 : index
    %c0_7 = arith.constant 0 : index
    %c0_8 = arith.constant 0 : index
    %4 = vector.load %arg1[%c0_6, %c2, %c0_7, %c0_8] : memref<1x3x8x8xf32, #tpu.memory_space<vmem>>, vector<1x1x8x8xf32>
    %5 = vector.shape_cast %4 : vector<1x1x8x8xf32> to vector<8x8xf32>
    %6 = tpu.iota {dimensions = array<i32: 0>} : vector<8x8xi32>
    %7 = tpu.iota {dimensions = array<i32: 1>} : vector<8x8xi32>
    %c8_i32 = arith.constant 8 : i32
    %8 = vector.broadcast %c8_i32 : i32 to vector<8x8xi32>
    %9 = arith.muli %6, %8 : vector<8x8xi32>
    %10 = arith.addi %9, %7 : vector<8x8xi32>
    %cst = arith.constant 1.000000e+10 : f32
    %11 = vector.broadcast %cst : f32 to vector<8x8xf32>
    %c0_9 = arith.constant 0 : index
    %c0_10 = arith.constant 0 : index
    %12 = vector.load %arg3[%c0_9, %c0_10] : memref<8x8xf32, #tpu.memory_space<vmem>>, vector<8x8xf32>
    tpu.vector_store %arg3[%c0_9, %c0_10], %11 {strides = array<i32>} : memref<8x8xf32, #tpu.memory_space<vmem>>, vector<8x8xf32>,
    %13 = vector.extract_strided_slice %1 {offsets = [0, 0], sizes = [1, 1], strides = [1, 1]} : vector<8x8xf32> to vector<1x1xf32>
    %14 = vector.extract_strided_slice %3 {offsets = [0, 0], sizes = [1, 1], strides = [1, 1]} : vector<8x8xf32> to vector<1x1xf32>
    %15 = vector.extract_strided_slice %5 {offsets = [0, 0], sizes = [1, 1], strides = [1, 1]} : vector<8x8xf32> to vector<1x1xf32>
    %c0_11 = arith.constant 0 : index
    %c0_12 = arith.constant 0 : index
    %c0_13 = arith.constant 0 : index
    %16 = vector.load %arg2[%c0_11, %c0_12, %c0_13] : memref<1x16x3xf32, #tpu.memory_space<vmem>>, vector<1x1x1xf32>
    %17 = vector.shape_cast %16 : vector<1x1x1xf32> to vector<1x1xf32>
    %18 = vector.shape_cast %13 : vector<1x1xf32> to vector<1x1x1xf32>
    tpu.vector_store %arg2[%c0_11, %c0_12, %c0_13], %18 {strides = array<i32>} : memref<1x16x3xf32, #tpu.memory_space<vmem>>, vector<1x1x1xf32>,
    %c0_14 = arith.constant 0 : index
    %c0_15 = arith.constant 0 : index
    %c1_16 = arith.constant 1 : index
    %19 = vector.load %arg2[%c0_14, %c0_15, %c1_16] : memref<1x16x3xf32, #tpu.memory_space<vmem>>, vector<1x1x1xf32>
    %20 = vector.shape_cast %19 : vector<1x1x1xf32> to vector<1x1xf32>
    %21 = vector.shape_cast %14 : vector<1x1xf32> to vector<1x1x1xf32>
    tpu.vector_store %arg2[%c0_14, %c0_15, %c1_16], %21 {strides = array<i32>} : memref<1x16x3xf32, #tpu.memory_space<vmem>>, vector<1x1x1xf32>,
    %c0_17 = arith.constant 0 : index
    %c0_18 = arith.constant 0 : index
    %c2_19 = arith.constant 2 : index
    %22 = vector.load %arg2[%c0_17, %c0_18, %c2_19] : memref<1x16x3xf32, #tpu.memory_space<vmem>>, vector<1x1x1xf32>
    %23 = vector.shape_cast %22 : vector<1x1x1xf32> to vector<1x1xf32>
    %24 = vector.shape_cast %15 : vector<1x1xf32> to vector<1x1x1xf32>
    tpu.vector_store %arg2[%c0_17, %c0_18, %c2_19], %24 {strides = array<i32>} : memref<1x16x3xf32, #tpu.memory_space<vmem>>, vector<1x1x1xf32>,
    %c1_i32 = arith.constant 1 : i32
    %c15_i32 = arith.constant 15 : i32
    %25 = arith.addi %c1_i32, %c15_i32 : i32
    %c1_i32_20 = arith.constant 1 : i32
    %26:3 = scf.for %arg4 = %c1_i32 to %25 step %c1_i32_20 iter_args(%arg5 = %13, %arg6 = %14, %arg7 = %15) -> (vector<1x1xf32>, vector<1x1xf32>, vector<1x1xf32>)  : i32 {
      %27 = vector.broadcast %arg5 : vector<1x1xf32> to vector<8x8xf32>
      %28 = arith.subf %1, %27 : vector<8x8xf32>
      %29 = vector.broadcast %arg6 : vector<1x1xf32> to vector<8x8xf32>
      %30 = arith.subf %3, %29 : vector<8x8xf32>
      %31 = vector.broadcast %arg7 : vector<1x1xf32> to vector<8x8xf32>
      %32 = arith.subf %5, %31 : vector<8x8xf32>
      %33 = arith.mulf %28, %28 : vector<8x8xf32>
      %34 = arith.mulf %30, %30 : vector<8x8xf32>
      %35 = arith.addf %33, %34 : vector<8x8xf32>
      %36 = arith.mulf %32, %32 : vector<8x8xf32>
      %37 = arith.addf %35, %36 : vector<8x8xf32>
      %c0_22 = arith.constant 0 : index
      %c0_23 = arith.constant 0 : index
      %38 = vector.load %arg3[%c0_22, %c0_23] : memref<8x8xf32, #tpu.memory_space<vmem>>, vector<8x8xf32>
      %39 = arith.minimumf %38, %37 : vector<8x8xf32>
      %c0_24 = arith.constant 0 : index
      %c0_25 = arith.constant 0 : index
      %40 = vector.load %arg3[%c0_24, %c0_25] : memref<8x8xf32, #tpu.memory_space<vmem>>, vector<8x8xf32>
      tpu.vector_store %arg3[%c0_24, %c0_25], %39 {strides = array<i32>} : memref<8x8xf32, #tpu.memory_space<vmem>>, vector<8x8xf32>,
      %cst_26 = arith.constant dense<0xFF800000> : vector<8xf32>
      %41 = vector.multi_reduction <maximumf>, %39, %cst_26 [1] : vector<8x8xf32> to vector<8xf32>
      %42 = vector.shape_cast %41 : vector<8xf32> to vector<8x1xf32>
      %cst_27 = arith.constant dense<0xFF800000> : vector<1xf32>
      %43 = vector.multi_reduction <maximumf>, %42, %cst_27 [0] : vector<8x1xf32> to vector<1xf32>
      %44 = vector.shape_cast %43 : vector<1xf32> to vector<1x1xf32>
      %45 = vector.broadcast %44 : vector<1x1xf32> to vector<8x8xf32>
      %46 = arith.cmpf oeq, %39, %45 : vector<8x8xf32>
      %c64_i32 = arith.constant 64 : i32
      %47 = vector.broadcast %c64_i32 : i32 to vector<8x8xi32>
      %48 = arith.select %46, %10, %47 : vector<8x8xi1>, vector<8x8xi32>
      %cst_28 = arith.constant dense<2147483647> : vector<8xi32>
      %49 = vector.multi_reduction <minsi>, %48, %cst_28 [1] : vector<8x8xi32> to vector<8xi32>
      %50 = vector.shape_cast %49 : vector<8xi32> to vector<8x1xi32>
      %cst_29 = arith.constant dense<2147483647> : vector<1xi32>
      %51 = vector.multi_reduction <minsi>, %50, %cst_29 [0] : vector<8x1xi32> to vector<1xi32>
      %52 = vector.shape_cast %51 : vector<1xi32> to vector<1x1xi32>
      %53 = vector.broadcast %52 : vector<1x1xi32> to vector<8x8xi32>
      %54 = arith.cmpi eq, %10, %53 : vector<8x8xi32>
      %cst_30 = arith.constant 0.000000e+00 : f32
      %55 = vector.broadcast %cst_30 : f32 to vector<8x8xf32>
      %56 = arith.select %54, %1, %55 : vector<8x8xi1>, vector<8x8xf32>
      %cst_31 = arith.constant dense<0.000000e+00> : vector<8xf32>
      %57 = vector.multi_reduction <add>, %56, %cst_31 [1] : vector<8x8xf32> to vector<8xf32>
      %58 = vector.shape_cast %57 : vector<8xf32> to vector<8x1xf32>
      %cst_32 = arith.constant dense<0.000000e+00> : vector<1xf32>
      %59 = vector.multi_reduction <add>, %58, %cst_32 [0] : vector<8x1xf32> to vector<1xf32>
      %60 = vector.shape_cast %59 : vector<1xf32> to vector<1x1xf32>
      %cst_33 = arith.constant 0.000000e+00 : f32
      %61 = vector.broadcast %cst_33 : f32 to vector<8x8xf32>
      %62 = arith.select %54, %3, %61 : vector<8x8xi1>, vector<8x8xf32>
      %cst_34 = arith.constant dense<0.000000e+00> : vector<8xf32>
      %63 = vector.multi_reduction <add>, %62, %cst_34 [1] : vector<8x8xf32> to vector<8xf32>
      %64 = vector.shape_cast %63 : vector<8xf32> to vector<8x1xf32>
      %cst_35 = arith.constant dense<0.000000e+00> : vector<1xf32>
      %65 = vector.multi_reduction <add>, %64, %cst_35 [0] : vector<8x1xf32> to vector<1xf32>
      %66 = vector.shape_cast %65 : vector<1xf32> to vector<1x1xf32>
      %cst_36 = arith.constant 0.000000e+00 : f32
      %67 = vector.broadcast %cst_36 : f32 to vector<8x8xf32>
      %68 = arith.select %54, %5, %67 : vector<8x8xi1>, vector<8x8xf32>
      %cst_37 = arith.constant dense<0.000000e+00> : vector<8xf32>
      %69 = vector.multi_reduction <add>, %68, %cst_37 [1] : vector<8x8xf32> to vector<8xf32>
      %70 = vector.shape_cast %69 : vector<8xf32> to vector<8x1xf32>
      %cst_38 = arith.constant dense<0.000000e+00> : vector<1xf32>
      %71 = vector.multi_reduction <add>, %70, %cst_38 [0] : vector<8x1xf32> to vector<1xf32>
      %72 = vector.shape_cast %71 : vector<1xf32> to vector<1x1xf32>
      %c0_39 = arith.constant 0 : index
      %73 = arith.index_cast %arg4 : i32 to index
      %c0_40 = arith.constant 0 : index
      %74 = vector.load %arg2[%c0_39, %73, %c0_40] : memref<1x16x3xf32, #tpu.memory_space<vmem>>, vector<1x1x1xf32>
      %75 = vector.shape_cast %74 : vector<1x1x1xf32> to vector<1x1xf32>
      %76 = vector.shape_cast %60 : vector<1x1xf32> to vector<1x1x1xf32>
      tpu.vector_store %arg2[%c0_39, %73, %c0_40], %76 {strides = array<i32>} : memref<1x16x3xf32, #tpu.memory_space<vmem>>, vector<1x1x1xf32>,
      %c0_41 = arith.constant 0 : index
      %77 = arith.index_cast %arg4 : i32 to index
      %c1_42 = arith.constant 1 : index
      %78 = vector.load %arg2[%c0_41, %77, %c1_42] : memref<1x16x3xf32, #tpu.memory_space<vmem>>, vector<1x1x1xf32>
      %79 = vector.shape_cast %78 : vector<1x1x1xf32> to vector<1x1xf32>
      %80 = vector.shape_cast %66 : vector<1x1xf32> to vector<1x1x1xf32>
      tpu.vector_store %arg2[%c0_41, %77, %c1_42], %80 {strides = array<i32>} : memref<1x16x3xf32, #tpu.memory_space<vmem>>, vector<1x1x1xf32>,
      %c0_43 = arith.constant 0 : index
      %81 = arith.index_cast %arg4 : i32 to index
      %c2_44 = arith.constant 2 : index
      %82 = vector.load %arg2[%c0_43, %81, %c2_44] : memref<1x16x3xf32, #tpu.memory_space<vmem>>, vector<1x1x1xf32>
      %83 = vector.shape_cast %82 : vector<1x1x1xf32> to vector<1x1xf32>
      %84 = vector.shape_cast %72 : vector<1x1xf32> to vector<1x1x1xf32>
      tpu.vector_store %arg2[%c0_43, %81, %c2_44], %84 {strides = array<i32>} : memref<1x16x3xf32, #tpu.memory_space<vmem>>, vector<1x1x1xf32>,
      scf.yield %60, %66, %72 : vector<1x1xf32>, vector<1x1xf32>, vector<1x1xf32>
    }
    %c15_i32_21 = arith.constant 15 : i32
    return
  }
  func.func @transform_0(%arg0: i32) -> (i32, i32, i32, i32) {
    %c0_i32 = arith.constant 0 : i32
    %c0_i32_0 = arith.constant 0 : i32
    %c0_i32_1 = arith.constant 0 : i32
    %c0_i32_2 = arith.constant 0 : i32
    return %arg0, %c0_i32, %c0_i32_0, %c0_i32_1 : i32, i32, i32, i32
  }
  func.func @transform_1(%arg0: i32) -> (i32, i32, i32) {
    %c0_i32 = arith.constant 0 : i32
    %c0_i32_0 = arith.constant 0 : i32
    %c0_i32_1 = arith.constant 0 : i32
    return %arg0, %c0_i32, %c0_i32_0 : i32, i32, i32
  }
}

</mosaic_0001>

<bundles_post_ra>
// kernel: tpu_custom_call.1
= control target key start
LH: loop header
LB: loop body
LE: loop exit
PB: predicated region body
PF: predicated region fallthrough
CT: control target
= control target key end

     0   :  { %6 = vsyncpa [#allocation4], 0  ;;  %s732_s0 = inlined_call_operand.hbm [shape: f32[2,3,8,8], index: 0, kind: input, shape index: {}]   ;;  %s733_s1 = inlined_call_operand.vmem [shape: f32[2,16,3], index: 1, kind: output, shape index: {}]  }
   0x1   :  { %8 = vsyncpa [#allocation4 + $0x1], 0  ;;  %s559_s6 = smov 0   ;;  %s561_s7 = smov 0  }
   0x2   :  { %s563_s8 = smov 0   ;;  %s565_s9 = smov 0  }
   0x3 LB: > { %s578_s10 = sadd.s32 4294967295, %s525_s9   ;;  %s581_s11 = sadd.s32 1, %s525_s9   ;;  %s525_s9 = sphi %s565_s9, %s744_s9   ;;  %s521_s8 = sphi %s563_s8, %s743_s8   ;;  %s517_s7 = sphi %s561_s7, %s742_s7   ;;  %s513_s6 = sphi %s559_s6, %s741_s6  }
   0x4   : > { %s18_s12 = ssub.s32 %s525_s9, %s581_s11  ;;  %s21_s13 = sadd.s32 1, %s521_s8 }
   0x5   : > { %p19_p0 = scmp.eq.s32.totalorder %s18_s12, 0  ;;  %p28_p1 = scmp.ne.s32.totalorder %s521_s8, %s517_s7 }
   0x6   : > { %p29_p2 = scmp.eq.s32.totalorder %s525_s9, 0  ;;  %p34_p3 = scmp.ne.s32.totalorder %s517_s7, %s513_s6 }
   0x7   : > { %s591_s14 = scalar_select %p19_p0, %s521_s8, %s21_s13  }
   0x8   : > { %p30_p4 = por %p29_p2, %p28_p1  ;;  %p35_p5 = scmp.eq.s32.totalorder %s578_s10, 0 }
   0x9   : > { %p375_p6 = scmp.lt.s32.totalorder %s525_s9, 2  ;;  %s84_s16 = sand.u32 1, %s521_s8  }
   0xa   : > { %p595_p7 = por %p35_p5, %p34_p3  ;;  %s360_s17 = smul.u32 24, %s84_s16 }
   0xb   : > { %s361_s18 = smul.u32 384, %s525_s9  ;;  %p601_p8 = pnand %p375_p6, %p30_p4 }
   0xc   : > { %s88_s23 = scalar_lea.vmem [#allocation3], %s360_s17  ;;  %s613_s25 = scalar_lea.sflag [#allocation4], %s84_s16 }
   0xd   : > { %s608_s22 = scalar_lea.hbm %s732_s0, %s361_s18  ;;  %s95_s24 = sshll.u32 %s88_s23, 4  ;;  %s610_s24 = int_to_ptr.vmem [resolvable:$true] %s95_s24 }
   0xe   : > { %s445_s26 = scalar_lea.hbm %s608_s22, 384  ;;  %p447_p11 = pneg %p601_p8 }
   0xf   : > { %p446_p10 = scmp.ne.s32.totalorder %s608_s22, %s445_s26  ;;  %s450_s29 = scalar_lea.hbm %s732_s0, 768 }
  0x10   : > { %p451_p0 = scmp.lt.u32.totalorder %s608_s22, %s732_s0  ;;  %p452_p1 = scmp.lt.u32.totalorder %s450_s29, %s445_s26 }
  0x11   : > { %p448_p12 = pnand %p447_p11, %p446_p10  ;;  %p454_p3 = scmp.lt.u32.totalorder %s445_s26, %s608_s22 }
  0x12   : > { %p453_p2 = por %p452_p1, %p451_p0 }
  0x13   : > { %p449_p13 = pneg %p448_p12 }
  0x14   : > { %p455_p4 = por %p454_p3, %p453_p2 }
  0x16   : > { %p456_p5 = pnand %p455_p4, %p449_p13 }
  0x18   : > { %459 = shalt.err (!%p456_p5)
}
  0x19   : > { %s460_s3 = scalar_lea.vmem %s610_s24, 384  ;;  %s543_s4 = smov [#allocation3]  }
  0x1a   : > { %p461_p6 = scmp.ne.s32.totalorder %s610_s24, %s460_s3  ;;  %s465_s5 = sshll.u32 %s543_s4, 4  ;;  %s466_s5 = int_to_ptr.vmem [resolvable:$false] %s465_s5 }
  0x1b   : > { %s467_s6 = scalar_lea.vmem %s466_s5, 768  ;;  %p468_p9 = scmp.lt.s32.totalorder %s610_s24, %s466_s5 }
  0x1c   : > { %p463_p10 = pnand %p461_p6, %p447_p11  ;;  %p469_p0 = scmp.lt.s32.totalorder %s467_s6, %s460_s3 }
  0x1e   : > { %p464_p12 = pneg %p463_p10  ;;  %p470_p1 = por %p469_p0, %p468_p9 }
  0x20   : > { %p471_p2 = pnand %p470_p1, %p464_p12 }
  0x22   : > { %474 = shalt.err (!%p471_p2)
}
  0x23   : > { %s544_s12 = smov 128   ;;  %s545_s13 = smov 8  }
  0x24   : > { %374 = dma.hbm_to_vmem [thread:$0]  (!%p601_p8), %s608_s22, 384, %s610_s24, %s613_s25, %s544_s12, %s544_s12, %s545_s13  }
  0x25   : > { %p103_p11 = scmp.lt.s32.totalorder %s525_s9, 3  ;;  %p736_p13 = scmp.ge.s32.totalorder %s525_s9, 1 }
  0x27   : > { %p104_p3 = pnand %p736_p13, %p103_p11 }
  0x28   : > { %s109_s16 = sand.u32 (!%p104_p3), 1, %s517_s7  }
  0x29   : > { %107 = sbr.rel (%p104_p3) target bundleno = 861 (0x35d), region = 24  ;;  %s110_s18 = scalar_lea.sflag (!%p104_p3), [#allocation4], %s109_s16 }
  0x2a   : > { %s362_s17 = smul.u32 (!%p104_p3), 24, %s109_s16 }
  0x2c   : > { %s113_s20 = scalar_lea.vmem (!%p104_p3), [#allocation3], %s362_s17 }
  0x30   : > { %508 = dma.done.wait (%p595_p7), %s110_s18, 384  }
  0x31   : > { %510 = vsyncadd (%p595_p7), %s110_s18, 4294966912  ;;  %p132_p9 = scmp.lt.s32.totalorder %s578_s10, 1  ;;  %vm148_vm0 = vcmask 64512   ;;  %v142_v0 = vlaneseq  ;;  %v546_v1 = vmov 1e+10   ;;  %vm150_vm1 = vcmask 0  }
  0x32   : > { %149 = vst.msk [vmem:[#allocation2] sm:$0xff] %vm148_vm0, %v546_v1  ;;  %v659_v6 = vld [vmem:[%s113_s20] sm:$0xff]   ;;  %v661_v7 = vld [vmem:[%s113_s20 + $0x8] sm:$0xff]   ;;  %v667_v8 = vld [vmem:[%s113_s20 + $0x10] sm:$0xff]   ;;  %s548_s15 = smov 2   ;;  %vm156_vm2 = vcmask 8200  }
  0x33   : > { %s746_s10 = smov (!%p132_p9, %s578_s10), 1  ;;  %v143_v2 = vshrl.u32 %v142_v0, 7  ;;  %v145_v3 = vand.u32 127, %v142_v0  ;;  %vm162_vm3 = vcmask 16400   ;;  %v737_v11 = vmov %v667_v8  ;;  %s683_s23 = smov 1  }
  0x34   : > { %s359_s9 = sshll.u32 %s746_s10, 4  ;;  %s547_s10 = smov 1   ;;  %v738_v12 = vmov %v661_v7  ;;  %v739_v13 = vmov %v659_v6 }
  0x35   : > { %v146_v4 = vmul.u32 8, %v143_v2  ;;  %s655_s22 = scalar_lea.vmem %s733_s1, %s359_s9  ;;  %153 = vrot.lane.b32.xlu0 %v661_v7, %s547_s10 }
  0x36   : > { %151 = vst.msk [vmem:[%s655_s22] sm:$0x1] %vm150_vm1, %v659_v6 }
  0x37   : > { %v657_v5 = vadd.s32 %v146_v4, %v145_v3 }
  0x39   : > { %159 = vrot.lane.b32.xlu0 %v667_v8, %s548_s15 }
  0xa7   : > { %v154_v9 = vpop.permute.xlu0 %153 }
  0xa8   : > { %157 = vst.msk [vmem:[%s655_s22] sm:$0x1] %vm156_vm2, %v154_v9 }
  0xab   : > { %v160_v10 = vpop.permute.xlu0 %159 }
  0xac   : > { %163 = vst.msk [vmem:[%s655_s22] sm:$0x1] %vm162_vm3, %v160_v10 }
  0xad LB: >> { %363 = vpush %v537_v13  ;;  %v193_v24 = vld [vmem:[#allocation2] sm:$0xff]  ;;  %s262_s27 = scalar_lea.vmem %s655_s22, %s541_s23  ;;  %s169_s23 = sadd.s32 1, %s541_s23   ;;  %s541_s23 = sphi %s683_s23, %s169_s23   ;;  %v537_v13 = vphi %v739_v13, %v241_v13   ;;  %v533_v12 = vphi %v738_v12, %v740_v12   ;;  %v529_v11 = vphi %v737_v11, %v261_v11  }
  0xae   : >> { %365 = vpush %v533_v12  ;;  %p166_p7 = scmp.ge.s32.totalorder %s169_s23, 16  }
  0xaf   : >> { %367 = vpush %v529_v11 }
  0xde   : >> { %s364_s24 = spop %363 }
  0xdf   : >> { %v175_v14 = vstv %s364_s24  ;;  %s366_s25 = spop %365 }
  0xe0   : >> { %v177_v15 = vsub.f32 %v659_v6, %v175_v14  ;;  %v180_v16 = vstv %s366_s25  ;;  %s368_s26 = spop %367 }
  0xe1   : >> { %v182_v17 = vsub.f32 %v661_v7, %v180_v16  ;;  %v185_v18 = vstv %s368_s26 }
  0xe2   : >> { %v188_v19 = vmul.f32 %v177_v15, %v177_v15  ;;  %v187_v20 = vsub.f32 %v667_v8, %v185_v18 }
  0xe3   : >> { %v189_v21 = vmul.f32 %v182_v17, %v182_v17 }
  0xe4   : >> { %v191_v22 = vmul.f32 %v187_v20, %v187_v20 }
  0xe5   : >> { %v190_v23 = vadd.f32 %v189_v21, %v188_v19 }
  0xe7   : >> { %v192_v25 = vadd.f32 %v191_v22, %v190_v23 }
  0xe9   : >> { %v194_v26 = vmin.f32 %v193_v24, %v192_v25 }
  0xeb   : >> { %v196_v27 = vsel %vm148_vm0, %v194_v26, -inf  ;;  %195 = vst.msk [vmem:[#allocation2] sm:$0xff] %vm148_vm0, %v194_v26 }
  0xec   : >> { %197 = vmax.xlane.f32.xlu0 %v196_v27 }
 0x179   : >> { %v198_v28 = vpop.xlane.xlu0 %197 }
 0x17a   : >> { %v199_v29 = vrot.slane %v198_v28, 4 }
 0x17c   : >> { %v200_v30 = vmax.f32 %v198_v28, %v199_v29 }
 0x17e   : >> { %v201_v31 = vrot.slane %v200_v30, 2 }
 0x180   : >> { %v202_v32 = vmax.f32 %v200_v30, %v201_v31 }
 0x182   : >> { %v203_v33 = vrot.slane %v202_v32, 1 }
 0x184   : >> { %v204_v34 = vmax.f32 %v202_v32, %v203_v33 }
 0x186   : >> { %vm205_vm4 = vcmp.eq.f32.partialorder %v194_v26, %v204_v34 }
 0x187   : >> { %v206_v35 = vsel %vm205_vm4, %v657_v5, 64 }
 0x188   : >> { %v207_v36 = vsel %vm148_vm0, %v206_v35, 2147483647 }
 0x189   : >> { %v209_v37 = vshra.s32 %v207_v36, 16  ;;  %v208_v39 = vand.u32 65535, %v207_v36 }
 0x18b   : >> { %v211_v38 = vcvt.s32.f32 %v209_v37  ;;  %v210_v41 = vcvt.s32.f32 %v208_v39 }
 0x18d   : >> { %212 = vmin.xlane.f32.xlu0 %v211_v38 }
 0x21a   : >> { %v213_v40 = vpop.xlane.xlu0 %212 }
 0x21b   : >> { %vm214_vm5 = vcmp.eq.f32.partialorder %v211_v38, %v213_v40  ;;  %v219_v43 = vcvt.f32.s32 %v213_v40 }
 0x21c   : >> { %v215_v42 = vsel %vm214_vm5, %v210_v41, inf }
 0x21d   : >> { %216 = vmin.xlane.f32.xlu1 %v215_v42  ;;  %v220_v45 = vshll.u32 %v219_v43, 16 }
 0x2aa   : >> { %v217_v44 = vpop.xlane.xlu1 %216 }
 0x2ab   : >> { %v218_v46 = vcvt.f32.s32 %v217_v44 }
 0x2ad   : >> { %v221_v47 = vadd.s32 %v220_v45, %v218_v46 }
 0x2af   : >> { %v222_v48 = vrot.slane %v221_v47, 4 }
 0x2b1   : >> { %vm223_vm6 = vcmp.lt.s32.totalorder %v221_v47, %v222_v48 }
 0x2b2   : >> { %v224_v49 = vsel %vm223_vm6, %v221_v47, %v222_v48 }
 0x2b3   : >> { %v225_v50 = vrot.slane %v224_v49, 2 }
 0x2b5   : >> { %vm226_vm7 = vcmp.lt.s32.totalorder %v224_v49, %v225_v50 }
 0x2b6   : >> { %v227_v51 = vsel %vm226_vm7, %v224_v49, %v225_v50 }
 0x2b7   : >> { %v228_v52 = vrot.slane %v227_v51, 1 }
 0x2b9   : >> { %vm229_vm8 = vcmp.lt.s32.totalorder %v227_v51, %v228_v52 }
 0x2ba   : >> { %v230_v53 = vsel %vm229_vm8, %v227_v51, %v228_v52 }
 0x2bb   : >> { %vm231_vm9 = vcmp.eq.s32.totalorder %v657_v5, %v230_v53 }
 0x2bc   : >> { %v242_v54 = vsel %vm231_vm9, %v661_v7, 0.0  ;;  %v232_v55 = vsel %vm231_vm9, %v659_v6, 0.0  ;;  %v252_v58 = vsel %vm231_vm9, %v667_v8, 0.0 }
 0x2bd   : >> { %v243_v56 = vsel %vm148_vm0, %v242_v54, 0.0  ;;  %v233_v57 = vsel %vm148_vm0, %v232_v55, 0.0  ;;  %v253_v59 = vsel %vm148_vm0, %v252_v58, 0.0 }
 0x2be   : >> { %244 = vadd.xlane.f32.xlu0 %v243_v56  ;;  %234 = vadd.xlane.f32.xlu1 %v233_v57 }
 0x2c2   : >> { %254 = vadd.xlane.f32.xlu1 %v253_v59 }
 0x34b   : >> { %v245_v60 = vpop.xlane.xlu0 %244  ;;  %v235_v61 = vpop.xlane.xlu1 %234 }
 0x34c   : >> { %v246_v62 = vrot.slane %v245_v60, 4  ;;  %v236_v63 = vrot.slane %v235_v61, 4 }
 0x34e   : >> { %v247_v0 = vadd.f32 %v246_v62, %v245_v60  ;;  %v237_v1 = vadd.f32 %v236_v63, %v235_v61 }
 0x34f   : >> { %v255_v2 = vpop.xlane.xlu1 %254 }
 0x350   : >> { %v248_v3 = vrot.slane %v247_v0, 2  ;;  %v238_v4 = vrot.slane %v237_v1, 2  ;;  %v256_v9 = vrot.slane %v255_v2, 4 }
 0x352   : >> { %v249_v10 = vadd.f32 %v248_v3, %v247_v0  ;;  %v239_v11 = vadd.f32 %v238_v4, %v237_v1  ;;  %v257_v12 = vadd.f32 %v256_v9, %v255_v2 }
 0x354   : >> { %v250_v13 = vrot.slane %v249_v10, 1  ;;  %v240_v14 = vrot.slane %v239_v11, 1  ;;  %v258_v15 = vrot.slane %v257_v12, 2 }
 0x356   : >> { %v251_v16 = vadd.f32 %v250_v13, %v249_v10   ;;  %v241_v13 = vadd.f32 %v240_v14, %v239_v11   ;;  %v259_v17 = vadd.f32 %v258_v15, %v257_v12  ;;  %168 = sbr.rel (!%p166_p7) target bundleno = 173 (0xad), region = 74 }
 0x358   : >> { %263 = vst.msk [vmem:[%s262_s27] sm:$0x1] %vm150_vm1, %v241_v13  ;;  %v260_v18 = vrot.slane %v259_v17, 1  ;;  %v740_v12 = vmov %v251_v16 }
 0x359   : >> { %264 = vst.msk [vmem:[%s262_s27] sm:$0x1] %vm156_vm2, %v251_v16 }
 0x35a   : >> { %v261_v11 = vadd.f32 %v260_v18, %v259_v17  }
 0x35c   : >> { %265 = vst.msk [vmem:[%s262_s27] sm:$0x1] %vm162_vm3, %v261_v11 }
 0x35d PF: > { %p11_p8 = scmp.ge.s32.totalorder %s581_s11, 4   ;;  %s741_s6 = smov %s517_s7 }
 0x35e   : > { %s742_s7 = smov %s521_s8  ;;  %s743_s8 = smov %s591_s14 }
 0x35f   : > { %s744_s9 = smov %s581_s11  ;;  %13 = sbr.rel (!%p11_p8) target bundleno = 3 (0x3), region = 85 }
 0x366   :  { %287 = vsyncpa [#allocation4], 1 }
 0x367   :  { %289 = vsyncpa [#allocation4 + $0x1], 1 }

</bundles_post_ra>
